<compile_context>
chip_gen: v7x
topology: tpu7x:2x2x1
jax: 0.10.0
libtpu: 0.0.40
codegen_flags: <defaults>
</compile_context>

<pallas_src>
import functools

import jax
import jax.numpy as jnp
from jax.experimental import pallas as pl
from jax.experimental.pallas import tpu as pltpu

LANE = 128  # vreg lane width / MXU-friendly padding target


def _round_up(x: int, m: int) -> int:
    return (x + m - 1) // m * m


def _mlp_kernel(z_ref, w_ref, b_ref, o_ref, x_pad_ref, *, d_in):
    # z_ref: (bm, d_in) f32   w_ref: (4, L, L) bf16   b_ref: (8, L) f32
    # o_ref: (bm, L) bf16     x_pad_ref: (bm, L) bf16 VMEM scratch
    #
    # Pad-to-lane-width happens here (VMEM only, no HBM slab). Padded lanes must be
    # exact zeros so they stay zero through every (zero-padded-weight) layer.
    x_pad_ref[...] = jnp.zeros_like(x_pad_ref)
    x_pad_ref[:, 0:d_in] = z_ref[...].astype(jnp.bfloat16)
    x = x_pad_ref[...]

    # Layers 1-3: ReLU(x @ W + b); f32 accumulate on the MXU, f32 epilogue on the VPU.
    for layer in range(3):
        h = jnp.dot(x, w_ref[layer], preferred_element_type=jnp.float32)
        h = jnp.maximum(h + b_ref[pl.ds(layer, 1), :], 0.0)
        x = h.astype(jnp.bfloat16)

    # Layer 4: no ReLU.
    h = jnp.dot(x, w_ref[3], preferred_element_type=jnp.float32) + b_ref[pl.ds(3, 1), :]
    o_ref[...] = h.astype(o_ref.dtype)  # bf16 writeback (lane-dense, unmasked vst)


def init_params(key, latent_dims, embed_size):
    """PyTorch nn.Linear-style init. Weights stored transposed: (in_features, out_features)."""
    d4, d2 = latent_dims // 4, latent_dims // 2
    dims = [(d4, d2), (d2, latent_dims), (latent_dims, embed_size), (embed_size, embed_size)]
    params = {}
    for i, (din, dout) in enumerate(dims, start=1):
        key, kw, kb = jax.random.split(key, 3)
        bound = 1.0 / jnp.sqrt(din)
        params[f"w{i}"] = jax.random.uniform(kw, (din, dout), jnp.float32, -bound, bound)
        params[f"b{i}"] = jax.random.uniform(kb, (dout,), jnp.float32, -bound, bound)
    return params


def pack_params(params):
    """Zero-pad every layer to (L, L) and pack:
       weights -> one (4, L, L) bf16 array, biases -> one (8, L) f32 array."""
    dims = []
    for i in range(1, 5):
        dims += list(params[f"w{i}"].shape)
    lane = _round_up(max(dims), LANE)

    ws, bs = [], []
    for i in range(1, 5):
        w, b = params[f"w{i}"], params[f"b{i}"]
        wp = jnp.zeros((lane, lane), jnp.float32).at[: w.shape[0], : w.shape[1]].set(w)
        bp = jnp.zeros((lane,), jnp.float32).at[: b.shape[0]].set(b)
        ws.append(wp)
        bs.append(bp)
    w_packed = jnp.stack(ws).astype(jnp.bfloat16)                           # (4, L, L)
    b_packed = jnp.zeros((8, lane), jnp.float32).at[:4].set(jnp.stack(bs))  # (8, L), sublane-aligned
    return w_packed, b_packed


@functools.partial(jax.jit, static_argnames=("embed_size", "block_m"))
def decoder_property_forward(z, w_packed, b_packed, embed_size, block_m=1024):
    """z: (batch, latent_dims // 4) f32.  Returns (batch, embed_size) bf16."""
    batch, d_in = z.shape
    lane = w_packed.shape[-1]

    # Row tile: big enough to amortize per-step overhead, but ~half the batch (rounded
    # to 8) so the grid has >= 2 tiles for megacore whenever the batch allows. Never
    # round the batch itself up to a tile multiple; Pallas handles the partial tail.
    if batch >= 8:
        bm = max(8, _round_up(-(-batch // 2), 8))
        bm = min(bm, block_m, _round_up(batch, 8))
    else:
        bm = batch  # block dim == full array dim (legal per the (8,128) rule)
    grid = (pl.cdiv(batch, bm),)

    cost = pl.CostEstimate(
        flops=2 * batch * lane * lane * 4,  # 4 padded (.,L)x(L,L) matmuls
        transcendentals=0,
        bytes_accessed=(batch * d_in * 4            # real input read (f32)
                        + w_packed.size * 2         # packed bf16 weights
                        + b_packed.size * 4         # packed f32 biases
                        + batch * lane * 2),        # bf16 output writeback
    )

    out = pl.pallas_call(
        functools.partial(_mlp_kernel, d_in=d_in),
        out_shape=jax.ShapeDtypeStruct((batch, lane), jnp.bfloat16),
        grid=grid,
        in_specs=[
            pl.BlockSpec((bm, d_in), lambda i: (i, 0)),          # activations: tiled over rows
            pl.BlockSpec(w_packed.shape, lambda i: (0, 0, 0)),   # all weights: resident
            pl.BlockSpec(b_packed.shape, lambda i: (0, 0)),      # all biases: resident
        ],
        out_specs=pl.BlockSpec((bm, lane), lambda i: (i, 0)),
        scratch_shapes=[pltpu.VMEM((bm, lane), jnp.bfloat16)],   # in-kernel padded activations
        compiler_params=pltpu.CompilerParams(
            dimension_semantics=("parallel",),                   # v7x: split row tiles over 2 TCs
        ),
        cost_estimate=cost,
    )(z, w_packed, b_packed)

    # TODO(synk): if the consumer tolerates it, return the packed 128-lane slab directly
    # (or a (batch, embed_size) masked-store output) to drop this small XLA slice.
    return out[:, :embed_size]


def reference_forward(z, params):
    """Pure-JAX reference mirroring the kernel's precision (bf16 operands, f32 accumulate)."""
    x = z
    for l in range(1, 5):
        h = jnp.dot(x.astype(jnp.bfloat16), params[f"w{l}"].astype(jnp.bfloat16),
                    preferred_element_type=jnp.float32) + params[f"b{l}"]
        x = jnp.maximum(h, 0.0) if l < 4 else h
    return x


if __name__ == "__main__":
    latent_dims = 32   # linear1: 8 -> 16, linear2: 16 -> 32
    embed_size = 32    # linear3: 32 -> 32, linear4: 32 -> 32
    batch = 8

    key = jax.random.PRNGKey(0)
    key, kz = jax.random.split(key)
    z = jax.random.normal(kz, (batch, latent_dims // 4), jnp.float32)

    params = init_params(key, latent_dims, embed_size)
    w_packed, b_packed = pack_params(params)

    out = decoder_property_forward(z, w_packed, b_packed, embed_size)
    out = jax.block_until_ready(out)

    ref = reference_forward(z, params)
    assert out.shape == (batch, embed_size), out.shape
    # Output is bf16 -> compare at bf16-level tolerance.
    assert jnp.allclose(out.astype(jnp.float32), ref, atol=2e-2, rtol=2e-2), "mismatch vs reference"

    print("KERNEL_OK")
</pallas_src>

<mosaic_0001>
module attributes {stable_mosaic.version = 11 : i64} {
  func.func @_mlp_kernel(%arg0: i32, %arg1: memref<8x8xf32, #tpu.memory_space<vmem>>, %arg2: memref<4x128x128xbf16, #tpu.memory_space<vmem>>, %arg3: memref<8x128xf32, #tpu.memory_space<vmem>>, %arg4: memref<8x128xbf16, #tpu.memory_space<vmem>>, %arg5: memref<8x128xbf16, #tpu.memory_space<vmem>>) attributes {dimension_semantics = [#tpu.dimension_semantics<parallel>], iteration_bounds = array<i64: 1>, scalar_prefetch = 0 : i64, scratch_operands = 1 : i64, tpu.core_type = #tpu.core_type<tc>, window_params = [{transform_indices = @transform_0, window_bounds = array<i64: 8, 8>}, {pipeline_mode = #tpu.pipeline_mode<synchronous>, transform_indices = @transform_1, window_bounds = array<i64: 4, 128, 128>}, {pipeline_mode = #tpu.pipeline_mode<synchronous>, transform_indices = @transform_2, window_bounds = array<i64: 8, 128>}, {transform_indices = @transform_3, window_bounds = array<i64: 8, 128>}]} {
    %cst = arith.constant 0.000000e+00 : bf16
    %0 = vector.broadcast %cst : bf16 to vector<8x128xbf16>
    %c0 = arith.constant 0 : index
    %c0_0 = arith.constant 0 : index
    %1 = vector.load %arg5[%c0, %c0_0] : memref<8x128xbf16, #tpu.memory_space<vmem>>, vector<8x128xbf16>
    tpu.vector_store %arg5[%c0, %c0_0], %0 {strides = array<i32>} : memref<8x128xbf16, #tpu.memory_space<vmem>>, vector<8x128xbf16>,
    %c0_1 = arith.constant 0 : index
    %c0_2 = arith.constant 0 : index
    %2 = vector.load %arg1[%c0_1, %c0_2] : memref<8x8xf32, #tpu.memory_space<vmem>>, vector<8x8xf32>
    %3 = arith.truncf %2 : vector<8x8xf32> to vector<8x8xbf16>
    %c0_3 = arith.constant 0 : index
    %c0_4 = arith.constant 0 : index
    %4 = vector.load %arg5[%c0_3, %c0_4] : memref<8x128xbf16, #tpu.memory_space<vmem>>, vector<8x8xbf16>
    tpu.vector_store %arg5[%c0_3, %c0_4], %3 {strides = array<i32>} : memref<8x128xbf16, #tpu.memory_space<vmem>>, vector<8x8xbf16>,
    %c0_5 = arith.constant 0 : index
    %c0_6 = arith.constant 0 : index
    %5 = vector.load %arg5[%c0_5, %c0_6] : memref<8x128xbf16, #tpu.memory_space<vmem>>, vector<8x128xbf16>
    %c0_7 = arith.constant 0 : index
    %c0_8 = arith.constant 0 : index
    %c0_9 = arith.constant 0 : index
    %6 = vector.load %arg2[%c0_7, %c0_8, %c0_9] : memref<4x128x128xbf16, #tpu.memory_space<vmem>>, vector<1x128x128xbf16>
    %7 = vector.shape_cast %6 : vector<1x128x128xbf16> to vector<128x128xbf16>
    %cst_10 = arith.constant dense<0.000000e+00> : vector<8x128xf32>
    %8 = tpu.matmul %5, %7, %cst_10 {dimension_numbers = #tpu.dot_dimension_numbers<[1], [0], [0], [1], [0, 0, 1, 1], [], []>} : vector<8x128xbf16>, vector<128x128xbf16>, vector<8x128xf32> -> vector<8x128xf32>
    %c0_11 = arith.constant 0 : index
    %c0_12 = arith.constant 0 : index
    %9 = vector.load %arg3[%c0_11, %c0_12] : memref<8x128xf32, #tpu.memory_space<vmem>>, vector<1x128xf32>
    %10 = vector.broadcast %9 : vector<1x128xf32> to vector<8x128xf32>
    %11 = arith.addf %8, %10 : vector<8x128xf32>
    %cst_13 = arith.constant 0.000000e+00 : f32
    %12 = vector.broadcast %cst_13 : f32 to vector<8x128xf32>
    %13 = arith.maximumf %11, %12 : vector<8x128xf32>
    %14 = arith.truncf %13 : vector<8x128xf32> to vector<8x128xbf16>
    %c1 = arith.constant 1 : index
    %c0_14 = arith.constant 0 : index
    %c0_15 = arith.constant 0 : index
    %15 = vector.load %arg2[%c1, %c0_14, %c0_15] : memref<4x128x128xbf16, #tpu.memory_space<vmem>>, vector<1x128x128xbf16>
    %16 = vector.shape_cast %15 : vector<1x128x128xbf16> to vector<128x128xbf16>
    %cst_16 = arith.constant dense<0.000000e+00> : vector<8x128xf32>
    %17 = tpu.matmul %14, %16, %cst_16 {dimension_numbers = #tpu.dot_dimension_numbers<[1], [0], [0], [1], [0, 0, 1, 1], [], []>} : vector<8x128xbf16>, vector<128x128xbf16>, vector<8x128xf32> -> vector<8x128xf32>
    %c1_17 = arith.constant 1 : index
    %c0_18 = arith.constant 0 : index
    %18 = vector.load %arg3[%c1_17, %c0_18] : memref<8x128xf32, #tpu.memory_space<vmem>>, vector<1x128xf32>
    %19 = vector.broadcast %18 : vector<1x128xf32> to vector<8x128xf32>
    %20 = arith.addf %17, %19 : vector<8x128xf32>
    %cst_19 = arith.constant 0.000000e+00 : f32
    %21 = vector.broadcast %cst_19 : f32 to vector<8x128xf32>
    %22 = arith.maximumf %20, %21 : vector<8x128xf32>
    %23 = arith.truncf %22 : vector<8x128xf32> to vector<8x128xbf16>
    %c2 = arith.constant 2 : index
    %c0_20 = arith.constant 0 : index
    %c0_21 = arith.constant 0 : index
    %24 = vector.load %arg2[%c2, %c0_20, %c0_21] : memref<4x128x128xbf16, #tpu.memory_space<vmem>>, vector<1x128x128xbf16>
    %25 = vector.shape_cast %24 : vector<1x128x128xbf16> to vector<128x128xbf16>
    %cst_22 = arith.constant dense<0.000000e+00> : vector<8x128xf32>
    %26 = tpu.matmul %23, %25, %cst_22 {dimension_numbers = #tpu.dot_dimension_numbers<[1], [0], [0], [1], [0, 0, 1, 1], [], []>} : vector<8x128xbf16>, vector<128x128xbf16>, vector<8x128xf32> -> vector<8x128xf32>
    %c2_23 = arith.constant 2 : index
    %c0_24 = arith.constant 0 : index
    %27 = vector.load %arg3[%c2_23, %c0_24] : memref<8x128xf32, #tpu.memory_space<vmem>>, vector<1x128xf32>
    %28 = vector.broadcast %27 : vector<1x128xf32> to vector<8x128xf32>
    %29 = arith.addf %26, %28 : vector<8x128xf32>
    %cst_25 = arith.constant 0.000000e+00 : f32
    %30 = vector.broadcast %cst_25 : f32 to vector<8x128xf32>
    %31 = arith.maximumf %29, %30 : vector<8x128xf32>
    %32 = arith.truncf %31 : vector<8x128xf32> to vector<8x128xbf16>
    %c3 = arith.constant 3 : index
    %c0_26 = arith.constant 0 : index
    %c0_27 = arith.constant 0 : index
    %33 = vector.load %arg2[%c3, %c0_26, %c0_27] : memref<4x128x128xbf16, #tpu.memory_space<vmem>>, vector<1x128x128xbf16>
    %34 = vector.shape_cast %33 : vector<1x128x128xbf16> to vector<128x128xbf16>
    %cst_28 = arith.constant dense<0.000000e+00> : vector<8x128xf32>
    %35 = tpu.matmul %32, %34, %cst_28 {dimension_numbers = #tpu.dot_dimension_numbers<[1], [0], [0], [1], [0, 0, 1, 1], [], []>} : vector<8x128xbf16>, vector<128x128xbf16>, vector<8x128xf32> -> vector<8x128xf32>
    %c3_29 = arith.constant 3 : index
    %c0_30 = arith.constant 0 : index
    %36 = vector.load %arg3[%c3_29, %c0_30] : memref<8x128xf32, #tpu.memory_space<vmem>>, vector<1x128xf32>
    %37 = vector.broadcast %36 : vector<1x128xf32> to vector<8x128xf32>
    %38 = arith.addf %35, %37 : vector<8x128xf32>
    %39 = arith.truncf %38 : vector<8x128xf32> to vector<8x128xbf16>
    %c0_31 = arith.constant 0 : index
    %c0_32 = arith.constant 0 : index
    %40 = vector.load %arg4[%c0_31, %c0_32] : memref<8x128xbf16, #tpu.memory_space<vmem>>, vector<8x128xbf16>
    tpu.vector_store %arg4[%c0_31, %c0_32], %39 {strides = array<i32>} : memref<8x128xbf16, #tpu.memory_space<vmem>>, vector<8x128xbf16>,
    return
  }
  func.func @transform_0(%arg0: i32) -> (i32, i32) {
    %c0_i32 = arith.constant 0 : i32
    %c0_i32_0 = arith.constant 0 : i32
    return %arg0, %c0_i32 : i32, i32
  }
  func.func @transform_1(%arg0: i32) -> (i32, i32, i32) {
    %c0_i32 = arith.constant 0 : i32
    %c0_i32_0 = arith.constant 0 : i32
    %c0_i32_1 = arith.constant 0 : i32
    %c0_i32_2 = arith.constant 0 : i32
    return %c0_i32, %c0_i32_0, %c0_i32_1 : i32, i32, i32
  }
  func.func @transform_2(%arg0: i32) -> (i32, i32) {
    %c0_i32 = arith.constant 0 : i32
    %c0_i32_0 = arith.constant 0 : i32
    %c0_i32_1 = arith.constant 0 : i32
    return %c0_i32, %c0_i32_0 : i32, i32
  }
  func.func @transform_3(%arg0: i32) -> (i32, i32) {
    %c0_i32 = arith.constant 0 : i32
    %c0_i32_0 = arith.constant 0 : i32
    return %arg0, %c0_i32 : i32, i32
  }
}

</mosaic_0001>

<bundles_post_ra>
// kernel: decoder_property_forward.1
= control target key start
LH: loop header
LB: loop body
LE: loop exit
PB: predicated region body
PF: predicated region fallthrough
CT: control target
= control target key end

     0   :  { %8 = vsyncpa [#allocation4], 0  ;;  %s926_s0 = inlined_call_operand.hbm [shape: f32[8,8], index: 0, kind: input, shape index: {}]   ;;  %s927_s1 = inlined_call_operand.hbm [shape: bf16[4,128,128], index: 1, kind: input, shape index: {}]   ;;  %s928_s2 = inlined_call_operand.hbm [shape: f32[8,128], index: 2, kind: input, shape index: {}]   ;;  %s929_s3 = inlined_call_operand.hbm [shape: bf16[8,128], index: 3, kind: output, shape index: {}]  }
   0x1   :  { %9 = vsyncpa [#allocation7], 0 }
   0x2   :  { %10 = vsyncpa [#allocation5], 0  ;;  %s809_s12 = smov [#allocation6]   ;;  %s715_s16 = scalar_lea.hbm %s927_s1, 4096 }
   0x3   :  { %s26_s13 = sshll.u32 %s809_s12, 4  ;;  %p716_p0 = scmp.ne.s32.totalorder %s927_s1, %s715_s16  ;;  %s27_s13 = int_to_ptr.vmem [resolvable:$true] %s26_s13 }
   0x4   :  { %p719_p1 = scmp.lt.u32.totalorder %s715_s16, %s927_s1 }
   0x6   :  { %p721_p2 = pnand %p719_p1, %p716_p0 }
   0x8   :  { %724 = shalt.err (!%p721_p2)
}
   0x9   :  { %s725_s21 = scalar_lea.vmem %s27_s13, 4096  ;;  %p730_p4 = scmp.lt.s32.totalorder %s27_s13, %s27_s13 }
   0xa   :  { %p726_p3 = scmp.ne.s32.totalorder %s27_s13, %s725_s21  ;;  %p731_p5 = scmp.lt.s32.totalorder %s725_s21, %s725_s21 }
   0xc   :  { %p732_p6 = por %p731_p5, %p730_p4 }
   0xe   :  { %p733_p7 = pnand %p732_p6, %p726_p3 }
  0x10   :  { %736 = shalt.err (!%p733_p7)
}
  0x11   :  { %s810_s22 = smov 64   ;;  %s811_s23 = smov 4  }
  0x12   :  { %32 = dma.hbm_to_vmem [thread:$0]  %s927_s1, 4096, %s27_s13, [#allocation7], %s810_s22, %s810_s22, %s811_s23  }
  0x13   :  { %s812_s26 = smov [#allocation3]   ;;  %s813_s28 = smov [#allocation8]  }
  0x14   :  { %s17_s27 = sshll.u32 %s812_s26, 4  ;;  %s39_s29 = sshll.u32 %s813_s28, 4  ;;  %s18_s27 = int_to_ptr.vmem [resolvable:$true] %s17_s27  ;;  %s40_s29 = int_to_ptr.vmem [resolvable:$true] %s39_s29 }
  0x15   :  { %s737_s5 = scalar_lea.hbm %s926_s0, 128 }
  0x16   :  { %p738_p8 = scmp.ne.s32.totalorder %s926_s0, %s737_s5  ;;  %p741_p9 = scmp.lt.u32.totalorder %s737_s5, %s926_s0 }
  0x18   :  { %p743_p10 = pnand %p741_p9, %p738_p8 }
  0x1a   :  { %746 = shalt.err (!%p743_p10)
}
  0x1b   :  { %s747_s1 = scalar_lea.vmem %s18_s27, 128  ;;  %p752_p12 = scmp.lt.s32.totalorder %s18_s27, %s18_s27 }
  0x1c   :  { %p748_p11 = scmp.ne.s32.totalorder %s18_s27, %s747_s1  ;;  %p753_p13 = scmp.lt.s32.totalorder %s747_s1, %s747_s1 }
  0x1e   :  { %p754_p0 = por %p753_p13, %p752_p12 }
  0x20   :  { %p755_p1 = pnand %p754_p0, %p748_p11 }
  0x22   :  { %758 = shalt.err (!%p755_p1)
}
  0x23   :  { %20 = dma.hbm_to_vmem [thread:$0]  %s926_s0, 128, %s18_s27, [#allocation4]  }
  0x24   :  { %s759_s14 = scalar_lea.hbm %s928_s2, 128 }
  0x25   :  { %p760_p2 = scmp.ne.s32.totalorder %s928_s2, %s759_s14  ;;  %p763_p3 = scmp.lt.u32.totalorder %s759_s14, %s928_s2 }
  0x27   :  { %p765_p4 = pnand %p763_p3, %p760_p2 }
  0x29   :  { %768 = shalt.err (!%p765_p4)
}
  0x2a   :  { %s769_s19 = scalar_lea.vmem %s40_s29, 128  ;;  %p774_p6 = scmp.lt.s32.totalorder %s40_s29, %s40_s29 }
  0x2b   :  { %p770_p5 = scmp.ne.s32.totalorder %s40_s29, %s769_s19  ;;  %p775_p7 = scmp.lt.s32.totalorder %s769_s19, %s769_s19 }
  0x2d   :  { %p776_p8 = por %p775_p7, %p774_p6 }
  0x2f   :  { %p777_p9 = pnand %p776_p8, %p770_p5 }
  0x31   :  { %780 = shalt.err (!%p777_p9)
}
  0x32   :  { %42 = dma.hbm_to_vmem [thread:$0]  %s928_s2, 128, %s40_s29, [#allocation7]  }
  0x33   :  { %803 = dma.done.wait [#allocation4], 128  }
  0x34   :  { %804 = vsyncadd [#allocation4], 4294967168 }
  0x35   :  { %805 = dma.done.wait [#allocation7], 4224  }
  0x36   :  { %806 = vsyncadd [#allocation7], 4294963072  ;;  %v814_v0 = vmov 0.0   ;;  %vm815_vm0 = vmmov 0   ;;  %v816_v1 = vmov 0   ;;  %v683_v2 = vld [vmem:[#allocation6] sm:$0xff]  }
  0x37   :  { %594 = vmatprep.subr.bf16.mxu0 %v814_v0  ;;  %610 = vmatprep.mubr.msk.bf16.mxu0 %vm815_vm0, %v814_v0  ;;  %53 = vst [vmem:[#allocation2] sm:$0xf] %v816_v1  ;;  %v684_v3 = vld [vmem:[#allocation6 + $0x8] sm:$0xff]   ;;  %v685_v4 = vld [vmem:[#allocation6 + $0x10] sm:$0xff]   ;;  %v54_v5 = vld [vmem:[#allocation3] sm:$0xff]  ;;  %vm56_vm1 = vcmask 60416  }
  0x38   :  { %614 = vmatprep.subr.bf16.mxu1 %v814_v0  ;;  %630 = vmatprep.mubr.msk.bf16.mxu1 %vm815_vm0, %v814_v0  ;;  %v55_v6 = vpack.c.bf16 %v54_v5, %v54_v5  ;;  %v691_v7 = vld [vmem:[#allocation6 + $0x40] sm:$0xff]   ;;  %v686_v8 = vld [vmem:[#allocation6 + $0x18] sm:$0xff]   ;;  %v692_v9 = vld [vmem:[#allocation6 + $0x48] sm:$0xff]   ;;  %s817_s2 = smov [#allocation9]  }
  0x39   :  { %595 = vmatpush3.bf16.msra.mxu0 %v683_v2  ;;  %615 = vmatpush3.bf16.msra.mxu1 %v691_v7  ;;  %v687_v10 = vld [vmem:[#allocation6 + $0x20] sm:$0xff]   ;;  %v693_v11 = vld [vmem:[#allocation6 + $0x50] sm:$0xff]   ;;  %v688_v12 = vld [vmem:[#allocation6 + $0x28] sm:$0xff]   ;;  %s512_s21 = sshll.u32 %s817_s2, 4  ;;  %s513_s21 = int_to_ptr.vmem [resolvable:$true] %s512_s21 }
  0x3a   :  { %596 = vmatprep.subr.bf16.mxu0 %v814_v0  ;;  %57 = vst.msk [vmem:[#allocation2] sm:$0xf] %vm56_vm1, %v55_v6  ;;  %616 = vmatprep.subr.bf16.mxu1 %v814_v0  ;;  %v694_v13 = vld [vmem:[#allocation6 + $0x58] sm:$0xff]   ;;  %v689_v14 = vld [vmem:[#allocation6 + $0x30] sm:$0xff]   ;;  %v695_v15 = vld [vmem:[#allocation6 + $0x60] sm:$0xff]   ;;  %s781_s22 = scalar_lea.vmem %s513_s21, 64  ;;  %p786_p11 = scmp.lt.s32.totalorder %s513_s21, %s513_s21 }
  0x3b   :  { %v690_v16 = vld [vmem:[#allocation6 + $0x38] sm:$0xff]   ;;  %v696_v17 = vld [vmem:[#allocation6 + $0x68] sm:$0xff]   ;;  %v697_v19 = vld [vmem:[#allocation6 + $0x70] sm:$0xff]   ;;  %p782_p10 = scmp.ne.s32.totalorder %s513_s21, %s781_s22  ;;  %p787_p12 = scmp.lt.s32.totalorder %s781_s22, %s781_s22 }
  0x3c   :  { %v698_v20 = vld [vmem:[#allocation6 + $0x78] sm:$0xff]   ;;  %v699_v21 = vld [vmem:[#allocation6 + $0x80] sm:$0xff]   ;;  %v700_v22 = vld [vmem:[#allocation6 + $0x88] sm:$0xff]  }
  0x3d   :  { %597 = vmatpush3.bf16.msra.mxu0 %v684_v3  ;;  %617 = vmatpush3.bf16.msra.mxu1 %v692_v9  ;;  %v701_v23 = vld [vmem:[#allocation6 + $0x90] sm:$0xff]   ;;  %v702_v24 = vld [vmem:[#allocation6 + $0x98] sm:$0xff]   ;;  %v703_v25 = vld [vmem:[#allocation6 + $0xa0] sm:$0xff]   ;;  %p788_p13 = por %p787_p12, %p786_p11 }
  0x3e   :  { %598 = vmatprep.subr.bf16.mxu0 %v814_v0  ;;  %618 = vmatprep.subr.bf16.mxu1 %v814_v0  ;;  %v704_v26 = vld [vmem:[#allocation6 + $0xa8] sm:$0xff]   ;;  %v522_v27 = vld [vmem:[#allocation8] ss:$0 sm:$0xff]  ;;  %v705_v35 = vld [vmem:[#allocation6 + $0xb0] sm:$0xff]  }
  0x3f   :  { %v706_v36 = vld [vmem:[#allocation6 + $0xb8] sm:$0xff]   ;;  %v707_v37 = vld [vmem:[#allocation6 + $0xc0] sm:$0xff]   ;;  %v708_v38 = vld [vmem:[#allocation6 + $0xc8] sm:$0xff]   ;;  %p789_p0 = pnand %p788_p13, %p782_p10 }
  0x40   :  { %v709_v39 = vld [vmem:[#allocation6 + $0xd0] sm:$0xff]   ;;  %v710_v40 = vld [vmem:[#allocation6 + $0xd8] sm:$0xff]   ;;  %v711_v41 = vld [vmem:[#allocation6 + $0xe0] sm:$0xff]  }
  0x41   :  { %599 = vmatpush3.bf16.msra.mxu0 %v685_v4  ;;  %619 = vmatpush3.bf16.msra.mxu1 %v693_v11  ;;  %v58_v18 = vld [vmem:[#allocation2] sm:$0xf]  ;;  %v712_v42 = vld [vmem:[#allocation6 + $0xe8] sm:$0xff]   ;;  %v531_v43 = vld [vmem:[#allocation8 + $0x1] ss:$0 sm:$0xff] }
  0x42   :  { %600 = vmatprep.subr.bf16.mxu0 %v814_v0  ;;  %620 = vmatprep.subr.bf16.mxu1 %v814_v0  ;;  %v713_v51 = vld [vmem:[#allocation6 + $0xf0] sm:$0xff]   ;;  %v714_v52 = vld [vmem:[#allocation6 + $0xf8] sm:$0xff]   ;;  %v540_v53 = vld [vmem:[#allocation8 + $0x2] ss:$0 sm:$0xff] }
  0x43   :  { %v549_v61 = vld [vmem:[#allocation8 + $0x3] ss:$0 sm:$0xff] }
  0x45   :  { %601 = vmatpush3.bf16.msra.mxu0 %v686_v8  ;;  %621 = vmatpush3.bf16.msra.mxu1 %v694_v13 }
  0x46   :  { %602 = vmatprep.subr.bf16.mxu0 %v814_v0  ;;  %622 = vmatprep.subr.bf16.mxu1 %v814_v0 }
  0x49   :  { %603 = vmatpush3.bf16.msra.mxu0 %v687_v10  ;;  %623 = vmatpush3.bf16.msra.mxu1 %v695_v15 }
  0x4a   :  { %604 = vmatprep.subr.bf16.mxu0 %v814_v0  ;;  %624 = vmatprep.subr.bf16.mxu1 %v814_v0 }
  0x4d   :  { %605 = vmatpush3.bf16.msra.mxu0 %v688_v12  ;;  %625 = vmatpush3.bf16.msra.mxu1 %v696_v17 }
  0x4e   :  { %606 = vmatprep.subr.bf16.mxu0 %v814_v0  ;;  %626 = vmatprep.subr.bf16.mxu1 %v814_v0 }
  0x51   :  { %607 = vmatpush3.bf16.msra.mxu0 %v689_v14  ;;  %627 = vmatpush3.bf16.msra.mxu1 %v697_v19 }
  0x52   :  { %608 = vmatprep.subr.bf16.mxu0 %v814_v0  ;;  %628 = vmatprep.subr.bf16.mxu1 %v814_v0 }
  0x55   :  { %609 = vmatpush3.bf16.msra.mxu0 %v690_v16  ;;  %629 = vmatpush3.bf16.msra.mxu1 %v698_v20 }
  0x56   :  { %634 = vmatprep.subr.bf16.mxu0 %v814_v0  ;;  %654 = vmatprep.subr.bf16.mxu1 %v814_v0 }
  0x58   :  { %611 = vmatmul.mubr.bf16.vlgmr.msra.gmra.mrb[0].mxu0 %v58_v18 }
  0x59   :  { %650 = vmatprep.mubr.msk.bf16.mxu0 %vm815_vm0, %v814_v0  ;;  %635 = vmatpush3.bf16.msra.mxu0 %v699_v21 }
  0x5a   :  { %636 = vmatprep.subr.bf16.mxu0 %v814_v0 }
  0x5d   :  { %637 = vmatpush3.bf16.msra.mxu0 %v700_v22 }
  0x5e   :  { %638 = vmatprep.subr.bf16.mxu0 %v814_v0 }
  0x61   :  { %639 = vmatpush3.bf16.msra.mxu0 %v701_v23 }
  0x62   :  { %640 = vmatprep.subr.bf16.mxu0 %v814_v0 }
  0x65   :  { %641 = vmatpush3.bf16.msra.mxu0 %v702_v24 }
  0x66   :  { %642 = vmatprep.subr.bf16.mxu0 %v814_v0 }
  0x69   :  { %643 = vmatpush3.bf16.msra.mxu0 %v703_v25 }
  0x6a   :  { %644 = vmatprep.subr.bf16.mxu0 %v814_v0 }
  0x6d   :  { %645 = vmatpush3.bf16.msra.mxu0 %v704_v26 }
  0x6e   :  { %646 = vmatprep.subr.bf16.mxu0 %v814_v0 }
  0x71   :  { %647 = vmatpush3.bf16.msra.mxu0 %v705_v35 }
  0x72   :  { %648 = vmatprep.subr.bf16.mxu0 %v814_v0 }
  0x75   :  { %649 = vmatpush3.bf16.msra.mxu0 %v706_v36 }
 0x12b   :  { %v162_v28 = vpop.f32.mrb[0].mxu0 }
 0x12c   :  { %v163_v29 = vadd.f32 %v522_v27, %v162_v28  ;;  %v612_v30 = vpop.f32.mrb[1].mxu0 }
 0x12d   :  { %v165_v31 = vpop.f32.mrb[2].mxu0 }
 0x12e   :  { %v168_v32 = vmax.f32 %v163_v29, 0.0  ;;  %v613_v33 = vpop.f32.mrb[3].mxu0 }
 0x130   :  { %v169_v34 = vpack.c.bf16 %v168_v32, %v168_v32 }
 0x132   :  { %631 = vmatmul.mubr.bf16.vlgmr.msra.gmra.mrb[0].mxu1 %v169_v34 }
 0x133   :  { %670 = vmatprep.mubr.msk.bf16.mxu1 %vm815_vm0, %v814_v0  ;;  %655 = vmatpush3.bf16.msra.mxu1 %v707_v37 }
 0x134   :  { %656 = vmatprep.subr.bf16.mxu1 %v814_v0 }
 0x137   :  { %657 = vmatpush3.bf16.msra.mxu1 %v708_v38 }
 0x138   :  { %658 = vmatprep.subr.bf16.mxu1 %v814_v0 }
 0x13b   :  { %659 = vmatpush3.bf16.msra.mxu1 %v709_v39 }
 0x13c   :  { %660 = vmatprep.subr.bf16.mxu1 %v814_v0 }
 0x13f   :  { %661 = vmatpush3.bf16.msra.mxu1 %v710_v40 }
 0x140   :  { %662 = vmatprep.subr.bf16.mxu1 %v814_v0 }
 0x143   :  { %663 = vmatpush3.bf16.msra.mxu1 %v711_v41 }
 0x144   :  { %664 = vmatprep.subr.bf16.mxu1 %v814_v0 }
 0x147   :  { %665 = vmatpush3.bf16.msra.mxu1 %v712_v42 }
 0x148   :  { %666 = vmatprep.subr.bf16.mxu1 %v814_v0 }
 0x14b   :  { %667 = vmatpush3.bf16.msra.mxu1 %v713_v51 }
 0x14c   :  { %668 = vmatprep.subr.bf16.mxu1 %v814_v0 }
 0x14f   :  { %669 = vmatpush3.bf16.msra.mxu1 %v714_v52 }
 0x205   :  { %v274_v44 = vpop.f32.mrb[0].mxu1 }
 0x206   :  { %v275_v45 = vadd.f32 %v531_v43, %v274_v44  ;;  %v632_v46 = vpop.f32.mrb[1].mxu1 }
 0x207   :  { %v277_v47 = vpop.f32.mrb[2].mxu1 }
 0x208   :  { %v280_v48 = vmax.f32 %v275_v45, 0.0  ;;  %v633_v49 = vpop.f32.mrb[3].mxu1 }
 0x20a   :  { %v281_v50 = vpack.c.bf16 %v280_v48, %v280_v48 }
 0x20c   :  { %651 = vmatmul.mubr.bf16.vlgmr.msra.gmra.mrb[4].mxu0 %v281_v50 }
 0x2df   :  { %v386_v54 = vpop.f32.mrb[4].mxu0 }
 0x2e0   :  { %v387_v55 = vadd.f32 %v540_v53, %v386_v54  ;;  %v652_v56 = vpop.f32.mrb[5].mxu0 }
 0x2e1   :  { %v389_v57 = vpop.f32.mrb[6].mxu0 }
 0x2e2   :  { %v392_v58 = vmax.f32 %v387_v55, 0.0  ;;  %v653_v59 = vpop.f32.mrb[7].mxu0 }
 0x2e4   :  { %v393_v60 = vpack.c.bf16 %v392_v58, %v392_v58 }
 0x2e6   :  { %671 = vmatmul.mubr.bf16.vlgmr.msra.gmra.mrb[4].mxu1 %v393_v60 }
 0x3b9   :  { %v498_v62 = vpop.f32.mrb[4].mxu1 }
 0x3ba   :  { %v499_v63 = vadd.f32 %v549_v61, %v498_v62  ;;  %v672_v1 = vpop.f32.mrb[5].mxu1 }
 0x3bb   :  { %v501_v2 = vpop.f32.mrb[6].mxu1 }
 0x3bc   :  { %v504_v3 = vpack.c.bf16 %v499_v63, %v499_v63  ;;  %v673_v0 = vpop.f32.mrb[7].mxu1 }
 0x3be   :  { %505 = vst [vmem:[#allocation9] sm:$0xf] %v504_v3 }
 0x3bf   :  { %792 = shalt.err (!%p789_p0)
}
 0x3c0   :  { %s793_s25 = scalar_lea.hbm %s929_s3, 64 }
 0x3c1   :  { %p794_p1 = scmp.ne.s32.totalorder %s929_s3, %s793_s25  ;;  %p797_p2 = scmp.lt.u32.totalorder %s793_s25, %s929_s3 }
 0x3c3   :  { %p799_p3 = pnand %p797_p2, %p794_p1 }
 0x3c5   :  { %802 = shalt.err (!%p799_p3)
}
 0x3c6   :  { %515 = dma.vmem_to_hbm [thread:$0]  %s513_s21, 64, %s929_s3, [#allocation5]  }
 0x3c7   :  { %807 = dma.done.wait [#allocation5], 64  }
 0x3c8   :  { %808 = vsyncadd [#allocation5], 4294967232 }
 0x3c9   :  { %519 = vsyncpa [#allocation4], 1 }
 0x3ca   :  { %520 = vsyncpa [#allocation7], 1 }
 0x3cb   :  { %521 = vsyncpa [#allocation5], 1 }

</bundles_post_ra>
